<compile_context>
chip_gen: v7x
topology: tpu7x:2x2x1
jax: 0.10.0
libtpu: 0.0.40
codegen_flags: <defaults>
</compile_context>

<pallas_src>
import functools
import math

import jax
import jax.numpy as jnp
from jax.experimental import pallas as pl
from jax.experimental.pallas import tpu as pltpu

# 32 MiB scoped VMEM: fits comfortably inside v5e/v6e (128 MiB) and v7x (64 MiB).
_VMEM_LIMIT = 32 * 1024 * 1024


def _pick_seq_tile(seq_len, target, multiple):
    """Largest tile <= target that divides seq_len and is a multiple of `multiple`.

    Falls back to the full extent (always a legal block shape) if no such
    divisor exists, so it can never return 0 or a layout-hostile tile.
    """
    if seq_len <= target:
        return seq_len
    t = (min(target, seq_len) // multiple) * multiple
    while t >= multiple:
        if seq_len % t == 0:
            return t
        t -= multiple
    return seq_len


# ----------------------------------------------------------------------------
# Kernel A: fused QKV projection (Conv1D: x @ W + b), lane-dense outputs.
# q is pre-scaled by 1/sqrt(d_head) here (once per token, not per attn step).
# ----------------------------------------------------------------------------
def _qkv_proj_kernel(x_ref, w_ref, b_ref, q_ref, k_ref, v_ref, *, d_model, q_scale):
    x = x_ref[0].astype(w_ref.dtype)                       # cast to MXU dtype
    acc = jnp.dot(x, w_ref[...], preferred_element_type=jnp.float32)
    acc = acc + b_ref[...]                                 # fp32 bias add
    q_ref[0] = (acc[:, :d_model] * q_scale).astype(q_ref.dtype)
    k_ref[0] = acc[:, d_model:2 * d_model].astype(k_ref.dtype)
    v_ref[0] = acc[:, 2 * d_model:].astype(v_ref.dtype)


def qkv_proj(x, w, b, q_scale, *, seq_tile=256, mxu_dtype=None):
    B, S, D = x.shape
    out_dtype = mxu_dtype if mxu_dtype is not None else x.dtype
    w = w.astype(out_dtype)                                # bf16 weight in HBM/VMEM
    b = b.reshape(1, 3 * D).astype(jnp.float32)
    tm = _pick_seq_tile(S, seq_tile, 16)
    itm = jnp.dtype(out_dtype).itemsize
    cost = pl.CostEstimate(
        flops=int(2 * B * S * D * 3 * D),
        transcendentals=0,
        bytes_accessed=int(B * S * D * x.dtype.itemsize + D * 3 * D * itm
                           + 3 * D * 4 + 3 * B * S * D * itm))
    kernel = functools.partial(_qkv_proj_kernel, d_model=D, q_scale=float(q_scale))
    out = jax.ShapeDtypeStruct((B, S, D), out_dtype)
    out_spec = pl.BlockSpec((1, tm, D), lambda bi, si: (bi, si, 0))
    return pl.pallas_call(
        kernel,
        out_shape=(out, out, out),
        grid=(B, S // tm),
        in_specs=[
            pl.BlockSpec((1, tm, D), lambda bi, si: (bi, si, 0)),
            # TODO(synk): for very large d_model on v7x, add pipeline_mode=pl.Buffered(1)
            # on this constant-index resident weight and/or tile the contraction dim.
            pl.BlockSpec((D, 3 * D), lambda bi, si: (0, 0)),
            pl.BlockSpec((1, 3 * D), lambda bi, si: (0, 0)),
        ],
        out_specs=(out_spec, out_spec, out_spec),
        compiler_params=pltpu.CompilerParams(
            dimension_semantics=("parallel", "parallel"),
            vmem_limit_bytes=_VMEM_LIMIT),
        cost_estimate=cost,
    )(x, w, b)


# ----------------------------------------------------------------------------
# Kernel B1: attention with materialized probabilities (module default path).
# Grid (B, S//tq); all heads processed per step, sharing q/k/v/mask DMAs.
# Exact softmax reciprocal because the probabilities are returned to the caller.
# ----------------------------------------------------------------------------
def _attn_probs_kernel(q_ref, k_ref, v_ref, mask_ref, ctx_ref, prob_ref,
                       *, num_heads, d_head):
    mask = mask_ref[0, 0].astype(jnp.float32)              # (tq, S), shared by all heads
    for h in range(num_heads):                             # static unroll over heads
        lo = h * d_head
        q = q_ref[0, :, lo:lo + d_head]                    # (tq, Dh), 1/scale pre-folded
        k = k_ref[0, :, lo:lo + d_head]                    # (S,  Dh)
        v = v_ref[0, :, lo:lo + d_head]                    # (S,  Dh)
        s = jax.lax.dot_general(q, k, (((1,), (1,)), ((), ())),
                                preferred_element_type=jnp.float32) + mask
        s = s - jnp.max(s, axis=-1, keepdims=True)
        e = jnp.exp(s)
        p = e / jnp.sum(e, axis=-1, keepdims=True)         # exact: probs are an output
        prob_ref[0, h] = p.astype(prob_ref.dtype)
        ctx_ref[0, :, lo:lo + d_head] = jnp.dot(
            p.astype(v.dtype), v,
            preferred_element_type=jnp.float32).astype(ctx_ref.dtype)


# ----------------------------------------------------------------------------
# Kernel B2: flash attention (online softmax, KV-tiled), no probs writeback.
# Grid (B, S//tq, S//tk) with the KV axis as an "arbitrary" accumulation axis.
# ----------------------------------------------------------------------------
def _attn_flash_kernel(q_ref, k_ref, v_ref, mask_ref, ctx_ref,
                       m_sc, l_sc, acc_sc, *, num_heads, d_head):
    ki = pl.program_id(2)

    @pl.when(ki == 0)
    def _():
        m_sc[...] = jnp.full_like(m_sc, -jnp.inf)
        l_sc[...] = jnp.zeros_like(l_sc)
        acc_sc[...] = jnp.zeros_like(acc_sc)

    mask = mask_ref[0, 0].astype(jnp.float32)              # (tq, tk), shared by all heads
    for h in range(num_heads):                             # static unroll over heads
        lo = h * d_head
        q = q_ref[0, :, lo:lo + d_head]
        k = k_ref[0, :, lo:lo + d_head]
        v = v_ref[0, :, lo:lo + d_head]
        s = jax.lax.dot_general(q, k, (((1,), (1,)), ((), ())),
                                preferred_element_type=jnp.float32) + mask
        m_prev = m_sc[h]                                   # (tq, 1)
        m_new = jnp.maximum(m_prev, jnp.max(s, axis=-1, keepdims=True))
        alpha = jnp.exp(m_prev - m_new)
        p = jnp.exp(s - m_new)
        l_sc[h] = alpha * l_sc[h] + jnp.sum(p, axis=-1, keepdims=True)
        acc_sc[h] = alpha * acc_sc[h] + jnp.dot(
            p.astype(v.dtype), v, preferred_element_type=jnp.float32)
        m_sc[h] = m_new

    @pl.when(ki == pl.num_programs(2) - 1)
    def _():
        for h in range(num_heads):
            lo = h * d_head
            inv = pl.reciprocal(l_sc[h], approx=True)      # EUP; ctx-only path
            ctx_ref[0, :, lo:lo + d_head] = (acc_sc[h] * inv).astype(ctx_ref.dtype)


def multi_head_attention(q, k, v, mask, num_heads, *, q_tile=128, kv_tile=256,
                         return_probs=True, probs_dtype=None):
    """q/k/v: (B, S, D) lane-dense (q pre-scaled), mask: (B, 1, S, S) additive."""
    B, S, D = q.shape
    d_head = D // num_heads
    itm = q.dtype.itemsize
    tq = _pick_seq_tile(S, q_tile, 16)
    matmul_flops = int(4 * B * S * S * D)
    exps = int(B * num_heads * S * S)

    if return_probs:
        probs_dtype = jnp.float32 if probs_dtype is None else probs_dtype
        p_itm = jnp.dtype(probs_dtype).itemsize
        cost = pl.CostEstimate(
            flops=matmul_flops, transcendentals=exps,
            bytes_accessed=int(3 * B * S * D * itm + B * S * S * mask.dtype.itemsize
                               + B * S * D * itm + B * num_heads * S * S * p_itm))
        kernel = functools.partial(_attn_probs_kernel,
                                   num_heads=num_heads, d_head=d_head)
        ctx, probs = pl.pallas_call(
            kernel,
            out_shape=(jax.ShapeDtypeStruct((B, S, D), q.dtype),
                       jax.ShapeDtypeStruct((B, num_heads, S, S), probs_dtype)),
            grid=(B, S // tq),
            in_specs=[
                pl.BlockSpec((1, tq, D), lambda bi, qi: (bi, qi, 0)),
                pl.BlockSpec((1, S, D), lambda bi, qi: (bi, 0, 0)),
                pl.BlockSpec((1, S, D), lambda bi, qi: (bi, 0, 0)),
                pl.BlockSpec((1, 1, tq, S), lambda bi, qi: (bi, 0, qi, 0)),
            ],
            out_specs=(pl.BlockSpec((1, tq, D), lambda bi, qi: (bi, qi, 0)),
                       pl.BlockSpec((1, num_heads, tq, S),
                                    lambda bi, qi: (bi, 0, qi, 0))),
            compiler_params=pltpu.CompilerParams(
                dimension_semantics=("parallel", "parallel"),
                vmem_limit_bytes=_VMEM_LIMIT),
            cost_estimate=cost,
        )(q, k, v, mask)
        return ctx, probs

    # Flash path: never materializes (B, H, S, S); VMEM bounded by O(tq * tk).
    tk = _pick_seq_tile(S, kv_tile, 128)   # mask block minor dim must be 128-mult or full
    cost = pl.CostEstimate(
        flops=matmul_flops, transcendentals=exps,
        bytes_accessed=int(3 * B * S * D * itm + B * S * S * mask.dtype.itemsize
                           + B * S * D * itm))
    kernel = functools.partial(_attn_flash_kernel, num_heads=num_heads, d_head=d_head)
    ctx = pl.pallas_call(
        kernel,
        out_shape=jax.ShapeDtypeStruct((B, S, D), q.dtype),
        grid=(B, S // tq, S // tk),
        in_specs=[
            pl.BlockSpec((1, tq, D), lambda bi, qi, ki: (bi, qi, 0)),
            pl.BlockSpec((1, tk, D), lambda bi, qi, ki: (bi, ki, 0)),
            pl.BlockSpec((1, tk, D), lambda bi, qi, ki: (bi, ki, 0)),
            pl.BlockSpec((1, 1, tq, tk), lambda bi, qi, ki: (bi, 0, qi, ki)),
        ],
        out_specs=pl.BlockSpec((1, tq, D), lambda bi, qi, ki: (bi, qi, 0)),
        scratch_shapes=[
            pltpu.VMEM((num_heads, tq, 1), jnp.float32),        # running max
            pltpu.VMEM((num_heads, tq, 1), jnp.float32),        # running denom
            pltpu.VMEM((num_heads, tq, d_head), jnp.float32),   # running context
        ],
        compiler_params=pltpu.CompilerParams(
            dimension_semantics=("parallel", "parallel", "arbitrary"),
            vmem_limit_bytes=_VMEM_LIMIT),
        cost_estimate=cost,
    )(q, k, v, mask)
    return ctx, None


# ----------------------------------------------------------------------------
# Kernel C: output projection (Conv1D: ctx @ W_fc + b_fc) on lane-dense ctx.
# ----------------------------------------------------------------------------
def _out_proj_kernel(ctx_ref, w_ref, b_ref, o_ref):
    acc = jnp.dot(ctx_ref[0], w_ref[...], preferred_element_type=jnp.float32)
    o_ref[0] = (acc + b_ref[...]).astype(o_ref.dtype)


def out_proj(ctx, w, b, out_dtype, *, seq_tile=256, mxu_dtype=None):
    B, S, D = ctx.shape
    wd = mxu_dtype if mxu_dtype is not None else ctx.dtype
    w = w.astype(wd)
    b = b.reshape(1, D).astype(jnp.float32)
    tm = _pick_seq_tile(S, seq_tile, 16)
    cost = pl.CostEstimate(
        flops=int(2 * B * S * D * D), transcendentals=0,
        bytes_accessed=int(B * S * D * ctx.dtype.itemsize
                           + D * D * jnp.dtype(wd).itemsize + D * 4
                           + B * S * D * jnp.dtype(out_dtype).itemsize))
    return pl.pallas_call(
        _out_proj_kernel,
        out_shape=jax.ShapeDtypeStruct((B, S, D), out_dtype),
        grid=(B, S // tm),
        in_specs=[
            pl.BlockSpec((1, tm, D), lambda bi, si: (bi, si, 0)),
            pl.BlockSpec((D, D), lambda bi, si: (0, 0)),     # resident weight
            pl.BlockSpec((1, D), lambda bi, si: (0, 0)),
        ],
        out_specs=pl.BlockSpec((1, tm, D), lambda bi, si: (bi, si, 0)),
        compiler_params=pltpu.CompilerParams(
            dimension_semantics=("parallel", "parallel"),
            vmem_limit_bytes=_VMEM_LIMIT),
        cost_estimate=cost,
    )(ctx, w, b)


# ----------------------------------------------------------------------------
# Full GPT2Attention forward (self-attention path: key=None, value=None).
# ----------------------------------------------------------------------------
def gpt2_attention(x, params, attention_mask, num_att_heads, *,
                   return_probs=True, mxu_dtype=jnp.bfloat16,
                   probs_dtype=None, q_tile=128, kv_tile=256):
    """attention_mask must be an additive mask of shape (B, 1, S, S).

    return_probs=True matches the module output (context, attn_prob); set it to
    False to use the flash path that skips the (B, H, S, S) HBM writeback.
    """
    B, S, D = x.shape
    assert D % num_att_heads == 0
    d_head = D // num_att_heads
    q_scale = 1.0 / math.sqrt(d_head)        # module does scores / d_head**0.5

    # TODO(synk): if the mask is known-causal it could be generated in-kernel via
    # broadcasted_iota to drop the mask HBM reads; kept as an input for module parity.
    q, k, v = qkv_proj(x, params["w_qkv"], params["b_qkv"], q_scale,
                       mxu_dtype=mxu_dtype)
    ctx, probs = multi_head_attention(
        q, k, v, attention_mask, num_att_heads,
        q_tile=q_tile, kv_tile=kv_tile,
        return_probs=return_probs, probs_dtype=probs_dtype)
    out = out_proj(ctx, params["w_fc"], params["b_fc"], x.dtype, mxu_dtype=mxu_dtype)
    return out, probs


# ----------------------------------------------------------------------------
# Pure-JAX reference for validation.
# ----------------------------------------------------------------------------
def gpt2_attention_ref(x, params, attention_mask, num_att_heads):
    B, S, D = x.shape
    d_head = D // num_att_heads
    scale = d_head ** 0.5
    qkv = x.reshape(B * S, D) @ params["w_qkv"] + params["b_qkv"]
    qkv = qkv.reshape(B, S, 3 * D)
    q, k, v = jnp.split(qkv, 3, axis=-1)

    def to_heads(t):
        return t.reshape(B, S, num_att_heads, d_head).transpose(0, 2, 1, 3)

    q, k, v = to_heads(q), to_heads(k), to_heads(v)
    scores = jnp.einsum("bhqd,bhkd->bhqk", q, k) / scale + attention_mask
    p = jax.nn.softmax(scores, axis=-1)
    ctx = jnp.einsum("bhqk,bhkd->bhqd", p, v)
    ctx = ctx.transpose(0, 2, 1, 3).reshape(B, S, D)
    out = (ctx.reshape(B * S, D) @ params["w_fc"] + params["b_fc"]).reshape(B, S, D)
    return out, p


if __name__ == "__main__":
    def make_inputs(B, S, D, key):
        k_x, k_wqkv, k_wfc = jax.random.split(key, 3)
        x = jax.random.normal(k_x, (B, S, D), dtype=jnp.float32)
        params = {
            "w_qkv": 0.02 * jax.random.normal(k_wqkv, (D, 3 * D), dtype=jnp.float32),
            "b_qkv": jnp.zeros((3 * D,), dtype=jnp.float32),
            "w_fc": 0.02 * jax.random.normal(k_wfc, (D, D), dtype=jnp.float32),
            "b_fc": jnp.zeros((D,), dtype=jnp.float32),
        }
        causal = jnp.tril(jnp.ones((S, S), dtype=jnp.float32))
        mask = jnp.broadcast_to((1.0 - causal) * -1e9, (B, 1, S, S)).astype(jnp.float32)
        return x, params, mask

    # --- primary config: d_model=32, 4 heads (d_head=8), batch=2, seq=8 ---
    B, S, D, H = 2, 8, 32, 4
    x, params, mask = make_inputs(B, S, D, jax.random.PRNGKey(0))
    out_ref, prob_ref = gpt2_attention_ref(x, params, mask, H)

    # Default path (bf16 MXU operands, probs returned for module parity).
    out, prob = gpt2_attention(x, params, mask, H)
    out = jax.block_until_ready(out)
    prob = jax.block_until_ready(prob)
    assert out.shape == (B, S, D) and prob.shape == (B, H, S, S)
    assert jnp.allclose(out, out_ref, atol=5e-3, rtol=5e-3), float(
        jnp.max(jnp.abs(out - out_ref)))
    assert jnp.allclose(prob, prob_ref, atol=5e-3, rtol=5e-3), float(
        jnp.max(jnp.abs(prob - prob_ref)))

    # Flash path (no (B,H,S,S) writeback).
    out2, prob2 = gpt2_attention(x, params, mask, H, return_probs=False)
    out2 = jax.block_until_ready(out2)
    assert prob2 is None
    assert jnp.allclose(out2, out_ref, atol=5e-3, rtol=5e-3)

    # Full fp32 MXU path (numerical-fidelity check).
    out3, prob3 = gpt2_attention(x, params, mask, H, mxu_dtype=jnp.float32)
    out3 = jax.block_until_ready(out3)
    assert jnp.allclose(out3, out_ref, atol=5e-3, rtol=5e-3)
    assert jnp.allclose(prob3, prob_ref, atol=5e-3, rtol=5e-3)

    # --- secondary config exercising q-tiling and the KV-tiled flash path ---
    B2, S2, D2, H2 = 2, 256, 32, 4
    x2, params2, mask2 = make_inputs(B2, S2, D2, jax.random.PRNGKey(1))
    oref2, pref2 = gpt2_attention_ref(x2, params2, mask2, H2)
    o_a, p_a = gpt2_attention(x2, params2, mask2, H2, q_tile=128, kv_tile=128)
    o_b, _ = gpt2_attention(x2, params2, mask2, H2, return_probs=False,
                            q_tile=128, kv_tile=128)
    jax.block_until_ready((o_a, p_a, o_b))
    assert jnp.allclose(o_a, oref2, atol=5e-3, rtol=5e-3)
    assert jnp.allclose(p_a, pref2, atol=5e-3, rtol=5e-3)
    assert jnp.allclose(o_b, oref2, atol=5e-3, rtol=5e-3)

    print("KERNEL_OK")
</pallas_src>

<mosaic_0001>
module attributes {stable_mosaic.version = 11 : i64} {
  func.func @_qkv_proj_kernel(%arg0: i32, %arg1: i32, %arg2: memref<1x8x32xf32, #tpu.memory_space<vmem>>, %arg3: memref<32x96xbf16, #tpu.memory_space<vmem>>, %arg4: memref<1x96xf32, #tpu.memory_space<vmem>>, %arg5: memref<1x8x32xbf16, #tpu.memory_space<vmem>>, %arg6: memref<1x8x32xbf16, #tpu.memory_space<vmem>>, %arg7: memref<1x8x32xbf16, #tpu.memory_space<vmem>>) attributes {dimension_semantics = [#tpu.dimension_semantics<parallel>, #tpu.dimension_semantics<parallel>], iteration_bounds = array<i64: 2, 1>, scalar_prefetch = 0 : i64, scratch_operands = 0 : i64, tpu.core_type = #tpu.core_type<tc>, window_params = [{transform_indices = @transform_0, window_bounds = array<i64: 1, 8, 32>}, {pipeline_mode = #tpu.pipeline_mode<synchronous>, transform_indices = @transform_1, window_bounds = array<i64: 32, 96>}, {pipeline_mode = #tpu.pipeline_mode<synchronous>, transform_indices = @transform_2, window_bounds = array<i64: 1, 96>}, {transform_indices = @transform_3, window_bounds = array<i64: 1, 8, 32>}, {transform_indices = @transform_4, window_bounds = array<i64: 1, 8, 32>}, {transform_indices = @transform_5, window_bounds = array<i64: 1, 8, 32>}]} {
    %c0 = arith.constant 0 : index
    %c0_0 = arith.constant 0 : index
    %c0_1 = arith.constant 0 : index
    %0 = vector.load %arg2[%c0, %c0_0, %c0_1] : memref<1x8x32xf32, #tpu.memory_space<vmem>>, vector<1x8x32xf32>
    %1 = vector.shape_cast %0 : vector<1x8x32xf32> to vector<8x32xf32>
    %2 = arith.truncf %1 : vector<8x32xf32> to vector<8x32xbf16>
    %c0_2 = arith.constant 0 : index
    %c0_3 = arith.constant 0 : index
    %3 = vector.load %arg3[%c0_2, %c0_3] : memref<32x96xbf16, #tpu.memory_space<vmem>>, vector<32x96xbf16>
    %cst = arith.constant dense<0.000000e+00> : vector<8x96xf32>
    %4 = tpu.matmul %2, %3, %cst {dimension_numbers = #tpu.dot_dimension_numbers<[1], [0], [0], [1], [0, 0, 1, 1], [], []>} : vector<8x32xbf16>, vector<32x96xbf16>, vector<8x96xf32> -> vector<8x96xf32>
    %c0_4 = arith.constant 0 : index
    %c0_5 = arith.constant 0 : index
    %5 = vector.load %arg4[%c0_4, %c0_5] : memref<1x96xf32, #tpu.memory_space<vmem>>, vector<1x96xf32>
    %6 = vector.broadcast %5 : vector<1x96xf32> to vector<8x96xf32>
    %7 = arith.addf %4, %6 : vector<8x96xf32>
    %8 = vector.extract_strided_slice %7 {offsets = [0, 0], sizes = [8, 32], strides = [1, 1]} : vector<8x96xf32> to vector<8x32xf32>
    %cst_6 = arith.constant 0.353553385 : f32
    %9 = vector.broadcast %cst_6 : f32 to vector<8x32xf32>
    %10 = arith.mulf %8, %9 : vector<8x32xf32>
    %11 = arith.truncf %10 : vector<8x32xf32> to vector<8x32xbf16>
    %c0_7 = arith.constant 0 : index
    %c0_8 = arith.constant 0 : index
    %c0_9 = arith.constant 0 : index
    %12 = vector.load %arg5[%c0_7, %c0_8, %c0_9] : memref<1x8x32xbf16, #tpu.memory_space<vmem>>, vector<1x8x32xbf16>
    %13 = vector.shape_cast %12 : vector<1x8x32xbf16> to vector<8x32xbf16>
    %14 = vector.shape_cast %11 : vector<8x32xbf16> to vector<1x8x32xbf16>
    tpu.vector_store %arg5[%c0_7, %c0_8, %c0_9], %14 {strides = array<i32>} : memref<1x8x32xbf16, #tpu.memory_space<vmem>>, vector<1x8x32xbf16>,
    %15 = vector.extract_strided_slice %7 {offsets = [0, 32], sizes = [8, 32], strides = [1, 1]} : vector<8x96xf32> to vector<8x32xf32>
    %16 = arith.truncf %15 : vector<8x32xf32> to vector<8x32xbf16>
    %c0_10 = arith.constant 0 : index
    %c0_11 = arith.constant 0 : index
    %c0_12 = arith.constant 0 : index
    %17 = vector.load %arg6[%c0_10, %c0_11, %c0_12] : memref<1x8x32xbf16, #tpu.memory_space<vmem>>, vector<1x8x32xbf16>
    %18 = vector.shape_cast %17 : vector<1x8x32xbf16> to vector<8x32xbf16>
    %19 = vector.shape_cast %16 : vector<8x32xbf16> to vector<1x8x32xbf16>
    tpu.vector_store %arg6[%c0_10, %c0_11, %c0_12], %19 {strides = array<i32>} : memref<1x8x32xbf16, #tpu.memory_space<vmem>>, vector<1x8x32xbf16>,
    %20 = vector.extract_strided_slice %7 {offsets = [0, 64], sizes = [8, 32], strides = [1, 1]} : vector<8x96xf32> to vector<8x32xf32>
    %21 = arith.truncf %20 : vector<8x32xf32> to vector<8x32xbf16>
    %c0_13 = arith.constant 0 : index
    %c0_14 = arith.constant 0 : index
    %c0_15 = arith.constant 0 : index
    %22 = vector.load %arg7[%c0_13, %c0_14, %c0_15] : memref<1x8x32xbf16, #tpu.memory_space<vmem>>, vector<1x8x32xbf16>
    %23 = vector.shape_cast %22 : vector<1x8x32xbf16> to vector<8x32xbf16>
    %24 = vector.shape_cast %21 : vector<8x32xbf16> to vector<1x8x32xbf16>
    tpu.vector_store %arg7[%c0_13, %c0_14, %c0_15], %24 {strides = array<i32>} : memref<1x8x32xbf16, #tpu.memory_space<vmem>>, vector<1x8x32xbf16>,
    return
  }
  func.func @transform_0(%arg0: i32, %arg1: i32) -> (i32, i32, i32) {
    %c0_i32 = arith.constant 0 : i32
    %c0_i32_0 = arith.constant 0 : i32
    return %arg0, %arg1, %c0_i32 : i32, i32, i32
  }
  func.func @transform_1(%arg0: i32, %arg1: i32) -> (i32, i32) {
    %c0_i32 = arith.constant 0 : i32
    %c0_i32_0 = arith.constant 0 : i32
    %c0_i32_1 = arith.constant 0 : i32
    return %c0_i32, %c0_i32_0 : i32, i32
  }
  func.func @transform_2(%arg0: i32, %arg1: i32) -> (i32, i32) {
    %c0_i32 = arith.constant 0 : i32
    %c0_i32_0 = arith.constant 0 : i32
    %c0_i32_1 = arith.constant 0 : i32
    return %c0_i32, %c0_i32_0 : i32, i32
  }
  func.func @transform_3(%arg0: i32, %arg1: i32) -> (i32, i32, i32) {
    %c0_i32 = arith.constant 0 : i32
    %c0_i32_0 = arith.constant 0 : i32
    return %arg0, %arg1, %c0_i32 : i32, i32, i32
  }
  func.func @transform_4(%arg0: i32, %arg1: i32) -> (i32, i32, i32) {
    %c0_i32 = arith.constant 0 : i32
    %c0_i32_0 = arith.constant 0 : i32
    return %arg0, %arg1, %c0_i32 : i32, i32, i32
  }
  func.func @transform_5(%arg0: i32, %arg1: i32) -> (i32, i32, i32) {
    %c0_i32 = arith.constant 0 : i32
    %c0_i32_0 = arith.constant 0 : i32
    return %arg0, %arg1, %c0_i32 : i32, i32, i32
  }
}

</mosaic_0001>

<bundles_post_ra>
// kernel: tpu_custom_call.1
= control target key start
LH: loop header
LB: loop body
LE: loop exit
PB: predicated region body
PF: predicated region fallthrough
CT: control target
= control target key end

     0   :  { %11 = vsyncpa [#allocation3], 0  ;;  %s1261_s0 = inlined_call_operand.hbm [shape: f32[2,8,32], index: 0, kind: input, shape index: {}]   ;;  %s1262_s1 = inlined_call_operand.hbm [shape: bf16[32,96], index: 1, kind: input, shape index: {}]   ;;  %s1263_s2 = inlined_call_operand.vmem [shape: f32[1,96], index: 2, kind: input, shape index: {}]   ;;  %s1264_s3 = inlined_call_operand.hbm [shape: bf16[2,8,32], index: 3, kind: output, shape index: {0}]   ;;  %s1265_s4 = inlined_call_operand.hbm [shape: bf16[2,8,32], index: 4, kind: output, shape index: {1}]   ;;  %s1266_s5 = inlined_call_operand.hbm [shape: bf16[2,8,32], index: 5, kind: output, shape index: {2}]  }
   0x1   :  { %13 = vsyncpa [#allocation3 + $0x1], 0 }
   0x2   :  { %14 = vsyncpa [#allocation6], 0 }
   0x3   :  { %15 = vsyncpa [#allocation4], 0 }
   0x4   :  { %17 = vsyncpa [#allocation4 + $0x1], 0 }
   0x5   :  { %18 = vsyncpa [#allocation9], 0 }
   0x6   :  { %20 = vsyncpa [#allocation9 + $0x1], 0  ;;  %s962_s18 = smov 0   ;;  %s964_s19 = smov 0  }
   0x7   :  { %s966_s20 = smov 0   ;;  %s968_s21 = smov 0  }
   0x8   :  { %s970_s22 = smov 0   ;;  %s972_s23 = smov 0  }
   0x9 LB: > { %s993_s24 = sadd.s32 4294967295, %s919_s23   ;;  %s1270_s25 = sadd.s32 4294967294, %s919_s23   ;;  %s919_s23 = sphi %s972_s23, %s26_s23   ;;  %s915_s22 = sphi %s970_s22, %s1290_s22   ;;  %s911_s21 = sphi %s968_s21, %s1289_s21   ;;  %s907_s20 = sphi %s966_s20, %s1288_s20   ;;  %s903_s19 = sphi %s964_s19, %s1287_s19   ;;  %s899_s18 = sphi %s962_s18, %s1286_s18  }
   0xa   : > { %p60_p0 = scmp.ne.s32.totalorder %s903_s19, %s899_s18  ;;  %p1267_p1 = scmp.eq.s32.totalorder %s993_s24, 0 }
   0xb   : > { %p134_p3 = scmp.eq.s32.totalorder %s1270_s25, 1  ;;  %p588_p5 = scmp.ge.s32.totalorder %s919_s23, 1 }
   0xc   : > { %p1004_p4 = por %p1267_p1, %p60_p0  ;;  %p197_p7 = scmp.lt.s32.totalorder %s919_s23, 3 }
   0xd   : > { %p1009_p6 = por %p134_p3, %p60_p0  ;;  %s921_s29 = smov [#allocation5]  }
   0xe   : > { %s1271_s26 = scalar_select %p1004_p4, 1, 0 }
   0xf   : > { %s1272_s27 = scalar_select %p1009_p6, 1, 0 }
  0x10   : > { %p1014_p8 = pnand %p588_p5, %p197_p7  ;;  %s209_s30 = sshll.u32 %s921_s29, 4  ;;  %s210_s30 = int_to_ptr.vmem [resolvable:$true] %s209_s30 }
  0x11   : > { %s38_s7 = sadd.s32 1, %s915_s22  ;;  %s715_s10 = scalar_lea.hbm %s1262_s1, 256 }
  0x12   : > { %s1273_s28 = scalar_select %p1014_p8, 1, 0 }
  0x13   : > { %p636_p9 = pneg %p1014_p8  ;;  %p716_p12 = scmp.ne.s32.totalorder %s1262_s1, %s715_s10 }
  0x14   : > { %p722_p5 = scmp.lt.u32.totalorder %s715_s10, %s1262_s1 }
  0x15   : > { %p1023_p11 = pnand %p636_p9, %p1267_p1 }
  0x17   : > { %p717_p13 = pneg %p1023_p11 }
  0x19   : > { %p718_p0 = pnand %p717_p13, %p716_p12 }
  0x1b   : > { %p719_p3 = pneg %p718_p0 }
  0x1d   : > { %p724_p7 = pnand %p722_p5, %p719_p3 }
  0x1f   : > { %727 = shalt.err (!%p724_p7)
}
  0x20   : > { %s728_s15 = scalar_lea.vmem %s210_s30, 256  ;;  %p736_p2 = scmp.lt.s32.totalorder %s210_s30, %s210_s30 }
  0x21   : > { %p729_p9 = scmp.ne.s32.totalorder %s210_s30, %s728_s15  ;;  %p737_p6 = scmp.lt.s32.totalorder %s728_s15, %s728_s15 }
  0x23   : > { %p731_p10 = pnand %p729_p9, %p717_p13  ;;  %p738_p4 = por %p737_p6, %p736_p2 }
  0x25   : > { %p732_p1 = pneg %p731_p10 }
  0x27   : > { %p739_p8 = pnand %p738_p4, %p732_p1 }
  0x29   : > { %742 = shalt.err (!%p739_p8)
}
  0x2a   : > { %s922_s16 = smov 64   ;;  %s923_s17 = smov 4  }
  0x2b   : > { %639 = dma.hbm_to_vmem [thread:$0]  (!%p1023_p11), %s1262_s1, 256, %s210_s30, [#allocation6], %s922_s16, %s922_s16, %s923_s17  }
  0x2c   : > { %p40_p1 = scmp.ge.s32.totalorder %s38_s7, 2  ;;  %s47_s9 = sadd.s32 1, %s907_s20 }
  0x2d   : > { %p54_p2 = scmp.ne.s32.totalorder %s907_s20, %s903_s19  ;;  %p55_p4 = scmp.eq.s32.totalorder %s919_s23, 0 }
  0x2e   : > { %s1292_s7 = smov (%p40_p1, %s38_s7), 0  ;;  %p1276_p8 = scmp.eq.s32.totalorder %s993_s24, 1 }
  0x2f   : > { %p1050_p6 = por %p55_p4, %p54_p2  ;;  %s42_s6 = ssub.s32 %s915_s22, %s1292_s7 }
  0x30   : > { %p1056_p10 = por %p1276_p8, %p54_p2  ;;  %p655_p12 = scmp.lt.s32.totalorder %s919_s23, 2 }
  0x31   : > { %p45_p11 = scmp.eq.s32.totalorder %s42_s6, 0  ;;  %s226_s30 = sand.u32 1, %s907_s20  }
  0x32   : > { %s591_s12 = sshll.u32 %s226_s30, 3  ;;  %s592_s14 = sshll.u32 %s915_s22, 7 }
  0x33   : > { %s1065_s13 = scalar_select %p45_p11, %s907_s20, %s47_s9  }
  0x34   : > { %s1071_s17 = scalar_lea.hbm %s1261_s0, %s592_s14  ;;  %s230_s29 = scalar_lea.vmem [#allocation2], %s591_s12 }
  0x35   : > { %s238_s8 = sshll.u32 %s230_s29, 4  ;;  %p1077_p13 = pnand %p655_p12, %p1050_p6  ;;  %s1073_s8 = int_to_ptr.vmem [resolvable:$true] %s238_s8 }
  0x36   : > { %s227_s9 = scalar_lea.sflag [#allocation3], %s226_s30  ;;  %s743_s25 = scalar_lea.hbm %s1071_s17, 128 }
  0x37   : > { %p744_p0 = scmp.ne.s32.totalorder %s1071_s17, %s743_s25  ;;  %p745_p3 = pneg %p1077_p13 }
  0x38   : > { %s748_s15 = scalar_lea.hbm %s1261_s0, 256  ;;  %p749_p9 = scmp.lt.u32.totalorder %s1071_s17, %s1261_s0 }
  0x39   : > { %p746_p5 = pnand %p745_p3, %p744_p0  ;;  %p750_p1 = scmp.lt.u32.totalorder %s748_s15, %s743_s25 }
  0x3a   : > { %p752_p4 = scmp.lt.u32.totalorder %s743_s25, %s1071_s17 }
  0x3b   : > { %p747_p7 = pneg %p746_p5  ;;  %p751_p2 = por %p750_p1, %p749_p9 }
  0x3d   : > { %p753_p6 = por %p752_p4, %p751_p2 }
  0x3f   : > { %p754_p8 = pnand %p753_p6, %p747_p7 }
  0x41   : > { %757 = shalt.err (!%p754_p8)
}
  0x42   : > { %s758_s30 = scalar_lea.vmem %s1073_s8, 128  ;;  %s924_s29 = smov [#allocation2]  }
  0x43   : > { %p759_p12 = scmp.ne.s32.totalorder %s1073_s8, %s758_s30  ;;  %s763_s12 = sshll.u32 %s924_s29, 4  ;;  %s764_s12 = int_to_ptr.vmem [resolvable:$false] %s763_s12 }
  0x44   : > { %s765_s14 = scalar_lea.vmem %s764_s12, 256  ;;  %p766_p5 = scmp.lt.s32.totalorder %s1073_s8, %s764_s12 }
  0x45   : > { %p761_p11 = pnand %p759_p12, %p745_p3  ;;  %p767_p9 = scmp.lt.s32.totalorder %s765_s14, %s758_s30 }
  0x47   : > { %p762_p0 = pneg %p761_p11  ;;  %p768_p1 = por %p767_p9, %p766_p5 }
  0x49   : > { %p769_p2 = pnand %p768_p1, %p762_p0 }
  0x4b   : > { %772 = shalt.err (!%p769_p2)
}
  0x4c   : > { %643 = dma.hbm_to_vmem [thread:$0]  (!%p1077_p13), %s1071_s17, 128, %s1073_s8, %s227_s9  }
  0x4d   : > { %p1279_p7 = scmp.ne.s32.totalorder %s1273_s28, 0 }
  0x4e   : > { %s1109_s25 = sand.u32 (!%p1279_p7), 1, %s903_s19   ;;  %p1280_p3 = scmp.ne.s32.totalorder (!%p1279_p7), %s1271_s26, 0 }
  0x4f   : > { %247 = sbr.rel (%p1279_p7) target bundleno = 467 (0x1d3), region = 32  ;;  %s594_s15 = sshll.u32 (!%p1279_p7), %s1109_s25, 3 }
  0x50   : > { %s250_s10 = scalar_lea.sflag (!%p1279_p7), [#allocation3], %s1109_s25  ;;  %s253_s16 = scalar_lea.vmem (!%p1279_p7), [#allocation2], %s594_s15 }
  0x56   : > { %882 = dma.done.wait (%p1280_p3), %s250_s10, 128  }
  0x57   : > { %884 = vsyncadd (%p1280_p3), %s250_s10, 4294967168  ;;  %p1281_p4 = scmp.eq.s32.totalorder %s993_s24, 0 }
  0x59   : > { %886 = dma.done.wait (%p1281_p4), [#allocation6], 256   ;;  %p1282_p13 = pmov %p1281_p4 }
  0x5a   : > { %v925_v0 = vmov 0.0   ;;  %vm926_vm0 = vmmov 0   ;;  %v713_v1 = vld [vmem:[#allocation5] sm:$0xff]   ;;  %v714_v2 = vld [vmem:[#allocation5 + $0x8] sm:$0xff]   ;;  %v295_v3 = vld [vmem:[%s253_s16] sm:$0xff]  ;;  %vm320_vm1 = vcmask 261120  }
  0x5b   : > { %888 = vsyncadd (%p1282_p13), [#allocation6], 4294967040  ;;  %616 = vmatprep.subr.bf16.mxu0 %v925_v0  ;;  %620 = vmatprep.mubr.msk.bf16.mxu0 %vm926_vm0, %v925_v0  ;;  %v296_v4 = vpack.c.bf16 %v295_v3, %v295_v3  ;;  %v599_v5 = vld [vmem:[%s1263_s2] ss:$0 sm:$0xff]  ;;  %s1125_s17 = sshll.u32 %s1109_s25, 2  ;;  %s1128_s8 = sshll.u32 %s911_s21, 6 }
  0x5c   : > { %617 = vmatpush3.bf16.msra.mxu0 %v713_v1  ;;  %s279_s6 = scalar_lea.vmem [#allocation7], %s1125_s17  ;;  %vm366_vm2 = vcmask 257024   ;;  %s927_s30 = smov 96  }
  0x5d   : > { %618 = vmatprep.subr.bf16.mxu0 %v925_v0  ;;  %s405_s9 = sshll.u32 %s279_s6, 4  ;;  %s1135_s14 = scalar_lea.hbm %s1264_s3, %s1128_s8  ;;  %s1137_s9 = int_to_ptr.vmem [resolvable:$true] %s405_s9 }
  0x5e   : > { %s381_s21 = scalar_lea.sflag [#allocation4], %s1109_s25  ;;  %s773_s15 = scalar_lea.vmem %s1137_s9, 64 }
  0x5f   : > { %p774_p6 = scmp.ne.s32.totalorder %s1137_s9, %s773_s15  ;;  %s928_s10 = smov [#allocation7]  }
  0x60   : > { %619 = vmatpush3.bf16.msra.mxu0 %v714_v2  ;;  %s777_s16 = sshll.u32 %s928_s10, 4  ;;  %s778_s16 = int_to_ptr.vmem [resolvable:$false] %s777_s16 }
  0x61   : > { %p775_p8 = pnand %p774_p6, %p1056_p10  ;;  %s779_s26 = scalar_lea.vmem %s778_s16, 128 }
  0x62   : > { %p780_p11 = scmp.lt.s32.totalorder %s1137_s9, %s778_s16  ;;  %p781_p0 = scmp.lt.s32.totalorder %s779_s26, %s773_s15 }
  0x63   : > { %621 = vmatmul.mubr.msk.bf16.vlgmr.msra.gmra.mrb[0].mxu0 %vm320_vm1, %v296_v4  ;;  %p776_p12 = pneg %p775_p8 }
  0x64   : > { %p782_p5 = por %p781_p0, %p780_p11 }
  0x66   : > { %p783_p9 = pnand %p782_p5, %p776_p12 }
 0x136   : > { %v358_v6 = vpop.f32.mrb[0].mxu0 }
 0x137   : > { %v359_v7 = vadd.f32 %v599_v5, %v358_v6  ;;  %v622_v8 = vpop.f32.mrb[1].mxu0 }
 0x138   : > { %v361_v9 = vpop.f32.mrb[2].mxu0 }
 0x139   : > { %v364_v10 = vmul.f32 0.35355338, %v359_v7  ;;  %v623_v11 = vpop.f32.mrb[3].mxu0  ;;  %v612_v12 = vpack.c.bf16 %v359_v7, %v359_v7 }
 0x13b   : > { %v365_v13 = vpack.c.bf16 %v364_v10, %v364_v10  ;;  %372 = vrot.lane.b32.xlu0 %v612_v12, %s927_s30 }
 0x13d   : > { %367 = vst.msk [vmem:[%s279_s6] sm:$0xf] %vm366_vm2, %v365_v13 }
 0x13e   : > { %786 = shalt.err (!%p783_p9)
}
 0x13f   : > { %s787_s25 = scalar_lea.hbm %s1135_s14, 64  ;;  %s791_s30 = scalar_lea.hbm %s1264_s3, 128 }
 0x140   : > { %p788_p1 = scmp.ne.s32.totalorder %s1135_s14, %s787_s25  ;;  %p792_p3 = scmp.lt.u32.totalorder %s1135_s14, %s1264_s3 }
 0x141   : > { %p793_p4 = scmp.lt.u32.totalorder %s791_s30, %s787_s25  ;;  %p795_p6 = scmp.lt.u32.totalorder %s787_s25, %s1135_s14 }
 0x142   : > { %p789_p2 = pnand %p788_p1, %p1056_p10 }
 0x143   : > { %p794_p13 = por %p793_p4, %p792_p3 }
 0x144   : > { %p790_p7 = pneg %p789_p2 }
 0x145   : > { %p796_p8 = por %p795_p6, %p794_p13 }
 0x147   : > { %p797_p12 = pnand %p796_p8, %p790_p7 }
 0x149   : > { %800 = shalt.err (!%p797_p12)
}
 0x14a   : > { %630 = dma.vmem_to_hbm [thread:$0]  (%p1056_p10), %s1137_s9, 64, %s1135_s14, %s381_s21  }
 0x14b   : > { %s929_s15 = smov 64   ;;  %s385_s10 = sand.u32 1, %s993_s24  }
 0x14c   : > { %376 = vrot.lane.b32.xlu0 %v612_v12, %s929_s15  ;;  %s286_s16 = scalar_lea.vmem [#allocation8], %s1125_s17  ;;  %s1168_s6 = scalar_lea.hbm %s1265_s4, %s1128_s8 }
 0x14d   : > { %s419_s26 = sshll.u32 %s286_s16, 4  ;;  %s293_s30 = scalar_lea.vmem [#allocation10], %s1125_s17  ;;  %s1170_s26 = int_to_ptr.vmem [resolvable:$true] %s419_s26 }
 0x14e   : > { %s1175_s29 = sshll.u32 %s293_s30, 4  ;;  %s1178_s24 = scalar_lea.sflag [#allocation9], %s385_s10  ;;  %s1209_s29 = int_to_ptr.vmem [resolvable:$true] %s1175_s29 }
 0x14f   : > { %s801_s9 = scalar_lea.vmem %s1170_s26, 64  ;;  %s930_s14 = smov [#allocation8]  }
 0x150   : > { %p802_p11 = scmp.ne.s32.totalorder %s1170_s26, %s801_s9  ;;  %s805_s21 = sshll.u32 %s930_s14, 4  ;;  %s806_s21 = int_to_ptr.vmem [resolvable:$false] %s805_s21 }
 0x151   : > { %s807_s12 = scalar_lea.vmem %s806_s21, 128  ;;  %p808_p9 = scmp.lt.s32.totalorder %s1170_s26, %s806_s21 }
 0x152   : > { %p803_p0 = pnand %p802_p11, %p1056_p10  ;;  %p809_p1 = scmp.lt.s32.totalorder %s807_s12, %s801_s9 }
 0x154   : > { %p804_p5 = pneg %p803_p0  ;;  %p810_p2 = por %p809_p1, %p808_p9 }
 0x156   : > { %p811_p7 = pnand %p810_p2, %p804_p5 }
 0x1ad   : > { %v373_v14 = vpop.permute.xlu0 %372 }
 0x1ae   : > { %375 = vst.msk [vmem:[%s286_s16] sm:$0xf] %vm366_vm2, %v373_v14 }
 0x1af   : > { %814 = shalt.err (!%p811_p7)
}
 0x1b0   : > { %s815_s15 = scalar_lea.hbm %s1168_s6, 64  ;;  %s819_s25 = scalar_lea.hbm %s1265_s4, 128 }
 0x1b1   : > { %p816_p3 = scmp.ne.s32.totalorder %s1168_s6, %s815_s15  ;;  %p820_p6 = scmp.lt.u32.totalorder %s1168_s6, %s1265_s4 }
 0x1b2   : > { %p821_p8 = scmp.lt.u32.totalorder %s819_s25, %s815_s15  ;;  %p823_p11 = scmp.lt.u32.totalorder %s815_s15, %s1168_s6 }
 0x1b3   : > { %p817_p4 = pnand %p816_p3, %p1056_p10 }
 0x1b4   : > { %p822_p12 = por %p821_p8, %p820_p6 }
 0x1b5   : > { %p818_p13 = pneg %p817_p4 }
 0x1b6   : > { %p824_p0 = por %p823_p11, %p822_p12 }
 0x1b8   : > { %p825_p5 = pnand %p824_p0, %p818_p13 }
 0x1ba   : > { %828 = shalt.err (!%p825_p5)
}
 0x1bb   : > { %631 = dma.vmem_to_hbm [thread:$0]  (%p1056_p10), %s1170_s26, 64, %s1168_s6, %s1178_s24  }
 0x1bc   : > { %s1206_s12 = scalar_lea.hbm %s1266_s5, %s1128_s8  ;;  %s829_s15 = scalar_lea.vmem %s1209_s29, 64 }
 0x1bd   : > { %p830_p9 = scmp.ne.s32.totalorder %s1209_s29, %s829_s15  ;;  %s931_s26 = smov [#allocation10]  }
 0x1be   : > { %v377_v15 = vpop.permute.xlu0 %376  ;;  %s833_s6 = sshll.u32 %s931_s26, 4  ;;  %s834_s6 = int_to_ptr.vmem [resolvable:$false] %s833_s6 }
 0x1bf   : > { %379 = vst.msk [vmem:[%s293_s30] sm:$0xf] %vm366_vm2, %v377_v15  ;;  %p831_p1 = pnand %p830_p9, %p1056_p10  ;;  %s835_s10 = scalar_lea.vmem %s834_s6, 128 }
 0x1c0   : > { %p836_p7 = scmp.lt.s32.totalorder %s1209_s29, %s834_s6  ;;  %p837_p3 = scmp.lt.s32.totalorder %s835_s10, %s829_s15 }
 0x1c1   : > { %p832_p2 = pneg %p831_p1 }
 0x1c2   : > { %p838_p4 = por %p837_p3, %p836_p7 }
 0x1c4   : > { %p839_p13 = pnand %p838_p4, %p832_p2 }
 0x1c6   : > { %842 = shalt.err (!%p839_p13)
}
 0x1c7   : > { %s843_s17 = scalar_lea.hbm %s1206_s12, 64  ;;  %s847_s16 = scalar_lea.hbm %s1266_s5, 128 }
 0x1c8   : > { %p844_p6 = scmp.ne.s32.totalorder %s1206_s12, %s843_s17  ;;  %p848_p11 = scmp.lt.u32.totalorder %s1206_s12, %s1266_s5 }
 0x1c9   : > { %p849_p0 = scmp.lt.u32.totalorder %s847_s16, %s843_s17  ;;  %p851_p9 = scmp.lt.u32.totalorder %s843_s17, %s1206_s12 }
 0x1ca   : > { %p845_p8 = pnand %p844_p6, %p1056_p10 }
 0x1cb   : > { %p850_p5 = por %p849_p0, %p848_p11 }
 0x1cc   : > { %p846_p12 = pneg %p845_p8 }
 0x1cd   : > { %p852_p1 = por %p851_p9, %p850_p5 }
 0x1cf   : > { %p853_p2 = pnand %p852_p1, %p846_p12 }
 0x1d1   : > { %856 = shalt.err (!%p853_p2)
}
 0x1d2   : > { %632 = dma.vmem_to_hbm [thread:$0]  (%p1056_p10), %s1209_s29, 64, %s1206_s12, %s1178_s24  }
 0x1d3 PF: > { %s445_s14 = sand.u32 1, %s899_s18   ;;  %p1283_p7 = scmp.ne.s32.totalorder %s1272_s27, 0 }
 0x1d4   : > { %p1284_p3 = scmp.ge.s32.totalorder %s919_s23, 2  ;;  %s446_s9 = scalar_lea.sflag [#allocation4], %s445_s14 }
 0x1d6   : > { %p645_p4 = pnand %p1284_p3, %p1283_p7 }
 0x1d8   : > { %890 = dma.done.wait (!%p645_p4), %s446_s9, 64  }
 0x1d9   : > { %892 = vsyncadd (!%p645_p4), %s446_s9, 4294967232  ;;  %s1285_s21 = sadd.s32 4294967294, %s919_s23  }
 0x1da   : > { %s454_s15 = sand.u32 1, %s1285_s21  }
 0x1db   : > { %s455_s26 = scalar_lea.sflag [#allocation9], %s454_s15 }
 0x1dc   : > { %894 = dma.done.wait (!%p645_p4), %s455_s26, 128  }
 0x1dd   : > { %896 = vsyncadd (!%p645_p4), %s455_s26, 4294967168  ;;  %s26_s23 = sadd.s32 1, %s919_s23   ;;  %s1286_s18 = smov %s903_s19 }
 0x1de   : > { %p23_p10 = scmp.ge.s32.totalorder %s26_s23, 4   ;;  %s1287_s19 = smov %s907_s20 }
 0x1df   : > { %s1288_s20 = smov %s1065_s13  ;;  %s1289_s21 = smov %s915_s22 }
 0x1e0   : > { %s1290_s22 = smov %s1292_s7  ;;  %25 = sbr.rel (!%p23_p10) target bundleno = 9 (0x9), region = 113 }
 0x1e7   :  { %469 = vsyncpa [#allocation3], 1 }
 0x1e8   :  { %471 = vsyncpa [#allocation3 + $0x1], 1 }
 0x1e9   :  { %472 = vsyncpa [#allocation6], 1 }
 0x1ea   :  { %473 = vsyncpa [#allocation4], 1 }
 0x1eb   :  { %475 = vsyncpa [#allocation4 + $0x1], 1 }
 0x1ec   :  { %476 = vsyncpa [#allocation9], 1 }
 0x1ed   :  { %478 = vsyncpa [#allocation9 + $0x1], 1 }

</bundles_post_ra>
